<compile_context>
chip_gen: v5e
topology: v5e:2x2
jax: 0.10.0
libtpu: 0.0.40
codegen_flags: <defaults>
</compile_context>

<pallas_src>
import functools

import jax
import jax.numpy as jnp
from jax import lax
from jax.experimental import pallas as pl
from jax.experimental.pallas import tpu as pltpu


def _round_up(v: int, m: int) -> int:
    return ((v + m - 1) // m) * m


def _tuned_defaults():
    """Pick (edge_tile, vmem_limit_bytes) from the physical VMEM of this TPU gen."""
    vmem_cap = 64 * 1024 * 1024
    try:
        info = pltpu.get_tpu_info()
        vmem_cap = int(getattr(info, "vmem_capacity_bytes", vmem_cap))
    except Exception:
        pass
    if vmem_cap >= 100 * 1024 * 1024:        # v5e / v6e: 128 MiB physical per core
        return 1024, 96 * 1024 * 1024
    return 512, 48 * 1024 * 1024             # v7x: 64 MiB physical -> leave headroom


def _power_flow_kernel(nf_full_ref, nf_tile_ref, ei_ref, ef_ref, out_ref, flow_ref,
                       *, inv_n):
    ni = pl.program_id(0)          # node tile (parallel)
    ke = pl.program_id(1)          # edge tile (arbitrary; reduction axis, last)

    @pl.when(ke == 0)
    def _():
        flow_ref[...] = jnp.zeros_like(flow_ref)

    # Full node slab (resident across the whole grid): |V|^2 for the source gather.
    v_re = nf_full_ref[0:1, :]                     # (1, N_pad) f32
    v_im = nf_full_ref[1:2, :]
    v_mag_sq = v_re * v_re + v_im * v_im           # (1, N_pad) f32

    src = ei_ref[0:1, :]                           # (1, TE) int32, -1 on padded edges
    dst = ei_ref[1:2, :]
    probs = ef_ref[0:1, :]                         # (1, TE) f32, 0 on padded edges
    rx = ef_ref[1:3, :]                            # (2, TE) f32, rows = [r; x]

    n_pad = v_mag_sq.shape[1]
    node_tile = nf_tile_ref.shape[1]
    te = src.shape[1]

    # Per-edge |V_src|^2 via a bf16 one-hot gather on the MXU (masks exact in bf16).
    all_ids = lax.broadcasted_iota(jnp.int32, (n_pad, 1), 0)      # column iota only
    src_mask = (all_ids == src).astype(jnp.bfloat16)              # (N_pad, TE)
    v_src_sq = jnp.dot(v_mag_sq.astype(jnp.bfloat16), src_mask,
                       preferred_element_type=jnp.float32)        # (1, TE) f32

    coef = probs / (rx + 1e-6)                                    # (2,TE)=[p/r; p/x]
    pq = (v_src_sq * coef).astype(jnp.bfloat16)                   # (2, TE)

    # Connection mask restricted to this node tile: bool OR, single bf16 cast.
    node0 = ni * node_tile
    tile_ids = node0 + lax.broadcasted_iota(jnp.int32, (node_tile, 1), 0)
    conn = ((tile_ids == src) | (tile_ids == dst)).astype(jnp.bfloat16)   # (TN, TE)

    # Scatter-add both flows onto the node tile in one bf16 MXU pass, f32 accumulate:
    # (2, TE) x (TN, TE)^T -> (2, TN)   (lane-dense along nodes).
    flow_ref[...] += lax.dot_general(
        pq, conn, dimension_numbers=(((1,), (1,)), ((), ())),
        preferred_element_type=jnp.float32)

    @pl.when(ke == pl.num_programs(1) - 1)
    def _():
        nft = nf_tile_ref[...]                     # (8, TN) this node tile's slab
        p_load = nft[2:3, :]
        q_load = nft[3:4, :]
        node_mask = nft[4:5, :]                    # 1 for real nodes, 0 for padding
        flows = flow_ref[...]
        p_imb = (p_load + flows[0:1, :]) ** 2
        q_imb = (q_load + flows[1:2, :]) ** 2
        power_balance = jnp.sum((p_imb + q_imb) * node_mask)

        v_mag = jnp.sqrt(nft[0:1, :] ** 2 + nft[1:2, :] ** 2)
        lower = jnp.maximum(0.95 - v_mag, 0.0)
        upper = jnp.maximum(v_mag - 1.05, 0.0)
        voltage = jnp.sum((lower * lower + upper * upper) * node_mask)

        # Per-node-tile partial loss written as a lane-dense (8, 128) tile; the
        # wrapper reads element [0, 0] of each tile and sums across node tiles.
        out_ref[...] = jnp.full((8, 128), (power_balance + voltage) * inv_n,
                                jnp.float32)


def power_flow_consistency(node_features, edge_index, edge_probs, edge_params,
                           tolerance: float = 0.1, edge_tile: int | None = None,
                           node_tile: int | None = None,
                           vmem_limit_bytes: int | None = None):
    """JAX/Pallas equivalent of PowerFlowConsistency.forward.

    `tolerance` is unused in the reference forward pass (kept for signature parity).
    """
    n = node_features.shape[0]
    e = edge_index.shape[1]
    if e == 0:
        # Mirrors the PyTorch module exactly: forward short-circuits to 0.0 when
        # there are no edges.
        return jnp.float32(0.0)

    d_edge_tile, d_vmem = _tuned_defaults()
    if edge_tile is None:
        edge_tile = d_edge_tile
    if vmem_limit_bytes is None:
        vmem_limit_bytes = d_vmem

    # Lane-dense node slab (8, N_pad) with N_pad a multiple of 128 (and of node_tile).
    n_pad = _round_up(max(n, 128), 128)
    if node_tile is None:
        node_tile = min(n_pad, 1024)
    node_tile = max(128, _round_up(min(node_tile, n_pad), 128))
    n_pad = _round_up(n_pad, node_tile)
    num_node_tiles = n_pad // node_tile

    nf = node_features.astype(jnp.float32)
    nf_t = jnp.zeros((8, n_pad), jnp.float32)
    nf_t = nf_t.at[0:4, :n].set(nf[:, 0:4].T)
    nf_t = nf_t.at[4, :n].set(1.0)

    # Edge tiling along the lane axis; cap the tile so per-step (N_pad,TE)+(TN,TE)
    # mask temporaries stay well under the VMEM budget.
    te = min(edge_tile, _round_up(e, 128))
    mask_bytes_per_col = (n_pad + node_tile) * 6      # bf16 masks + bool/int temps
    te_cap = max(128, ((vmem_limit_bytes // 4) // mask_bytes_per_col) // 128 * 128)
    te = max(128, min(te, te_cap))
    e_pad = _round_up(e, te)
    num_edge_tiles = e_pad // te

    ei = jnp.full((2, e_pad), -1, jnp.int32)          # -1 never matches a node id
    ei = ei.at[:, :e].set(edge_index.astype(jnp.int32))
    ef = jnp.zeros((3, e_pad), jnp.float32)           # probs = 0 on padded edges
    ef = ef.at[0, :e].set(edge_probs.astype(jnp.float32))
    ef = ef.at[1, :e].set(edge_params[:, 0].astype(jnp.float32))
    ef = ef.at[2, :e].set(edge_params[:, 1].astype(jnp.float32))

    kernel = functools.partial(_power_flow_kernel, inv_n=1.0 / n)
    out = pl.pallas_call(
        kernel,
        out_shape=jax.ShapeDtypeStruct((num_node_tiles * 8, 128), jnp.float32),
        grid_spec=pltpu.PrefetchScalarGridSpec(
            num_scalar_prefetch=0,
            grid=(num_node_tiles, num_edge_tiles),
            in_specs=[
                pl.BlockSpec((8, n_pad), lambda i, k: (0, 0)),       # full slab, resident
                pl.BlockSpec((8, node_tile), lambda i, k: (0, i)),   # this node tile
                pl.BlockSpec((2, te), lambda i, k: (0, k)),          # [src; dst] tile
                pl.BlockSpec((3, te), lambda i, k: (0, k)),          # [probs; r; x] tile
            ],
            out_specs=pl.BlockSpec((8, 128), lambda i, k: (i, 0)),
            scratch_shapes=[pltpu.VMEM((2, node_tile), jnp.float32)],
        ),
        compiler_params=pltpu.CompilerParams(
            dimension_semantics=("parallel", "arbitrary"),
            vmem_limit_bytes=vmem_limit_bytes,
        ),
    )(nf_t, nf_t, ei, ef)

    partials = out.reshape(num_node_tiles, 8, 128)[:, 0, 0]
    return jnp.sum(partials)


def _reference(node_features, edge_index, edge_probs, edge_params):
    """Pure-JAX reference mirroring the PyTorch module (exact elementwise ops)."""
    nf = node_features.astype(jnp.float32)
    src, dst = edge_index[0], edge_index[1]
    v_mag_sq = nf[:, 0] ** 2 + nf[:, 1] ** 2
    v_mag = jnp.sqrt(v_mag_sq)
    v_src_sq = v_mag_sq[src]
    pe = v_src_sq / (edge_params[:, 0] + 1e-6) * edge_probs
    qe = v_src_sq / (edge_params[:, 1] + 1e-6) * edge_probs
    n = nf.shape[0]
    node_ids = jnp.arange(n)[:, None]
    conn = ((node_ids == src[None, :]) | (node_ids == dst[None, :])).astype(jnp.float32)
    p_flow = jnp.sum(conn * pe[None, :], axis=1)
    q_flow = jnp.sum(conn * qe[None, :], axis=1)
    pb = jnp.mean((nf[:, 2] + p_flow) ** 2 + (nf[:, 3] + q_flow) ** 2)
    vl = jnp.mean(jnp.maximum(0.95 - v_mag, 0.0) ** 2 + jnp.maximum(v_mag - 1.05, 0.0) ** 2)
    return pb + vl


if __name__ == "__main__":
    key = jax.random.PRNGKey(0)

    def make_case(k, n_nodes, n_edges):
        k1, k2, k3, k4, k5 = jax.random.split(k, 5)
        v = 1.0 + 0.05 * jax.random.normal(k1, (n_nodes, 2), dtype=jnp.float32)
        loads = 0.1 * jax.random.normal(k2, (n_nodes, 2), dtype=jnp.float32)
        node_features = jnp.concatenate([v, loads], axis=1)                       # (N, 4)
        edge_index = jax.random.randint(k3, (2, n_edges), 0, n_nodes, jnp.int32)  # (2, E)
        edge_probs = jax.random.uniform(k4, (n_edges,), dtype=jnp.float32)        # (E,)
        edge_params = 0.1 + jax.random.uniform(k5, (n_edges, 2), dtype=jnp.float32)
        return node_features, edge_index, edge_probs, edge_params

    k_a, k_b = jax.random.split(key)
    case_small = make_case(k_a, 16, 24)    # single edge tile (module-scale shapes)
    case_multi = make_case(k_b, 40, 700)   # exercises padding + multi-tile accumulation

    for args in (case_small, case_multi):
        loss = jax.block_until_ready(power_flow_consistency(*args))
        ref = _reference(*args)
        # bf16 MXU operands (exact 0/1 masks; |V|^2 and pq rounded to bf16) trade
        # ~1e-3 typical / <~1e-2 worst-case relative error for ~2x MXU throughput,
        # on top of the MXU's non-bitwise f32 accumulation.
        assert jnp.allclose(loss, ref, rtol=2e-2, atol=2e-3), (loss, ref)

    print("KERNEL_OK")
</pallas_src>

<mosaic_0001>
module attributes {stable_mosaic.version = 11 : i64} {
  func.func @_power_flow_kernel(%arg0: i32, %arg1: i32, %arg2: memref<8x128xf32, #tpu.memory_space<vmem>>, %arg3: memref<8x128xf32, #tpu.memory_space<vmem>>, %arg4: memref<2x128xi32, #tpu.memory_space<vmem>>, %arg5: memref<3x128xf32, #tpu.memory_space<vmem>>, %arg6: memref<8x128xf32, #tpu.memory_space<vmem>>, %arg7: memref<2x128xf32, #tpu.memory_space<vmem>>) attributes {dimension_semantics = [#tpu.dimension_semantics<parallel>, #tpu.dimension_semantics<arbitrary>], iteration_bounds = array<i64: 1, 1>, scalar_prefetch = 0 : i64, scratch_operands = 1 : i64, tpu.core_type = #tpu.core_type<tc>, window_params = [{pipeline_mode = #tpu.pipeline_mode<synchronous>, transform_indices = @transform_0, window_bounds = array<i64: 8, 128>}, {transform_indices = @transform_1, window_bounds = array<i64: 8, 128>}, {transform_indices = @transform_2, window_bounds = array<i64: 2, 128>}, {transform_indices = @transform_3, window_bounds = array<i64: 3, 128>}, {transform_indices = @transform_4, window_bounds = array<i64: 8, 128>}]} {
    %c0_i32 = arith.constant 0 : i32
    %0 = arith.cmpi eq, %arg1, %c0_i32 : i32
    %1 = arith.extui %0 : i1 to i32
    %c0_i32_0 = arith.constant 0 : i32
    %2 = arith.cmpi ne, %1, %c0_i32_0 : i32
    scf.if %2 {
      %cst_19 = arith.constant 0.000000e+00 : f32
      %49 = vector.broadcast %cst_19 : f32 to vector<2x128xf32>
      %c0_20 = arith.constant 0 : index
      %c0_21 = arith.constant 0 : index
      %50 = vector.load %arg7[%c0_20, %c0_21] : memref<2x128xf32, #tpu.memory_space<vmem>>, vector<2x128xf32>
      tpu.vector_store %arg7[%c0_20, %c0_21], %49 {strides = array<i32>} : memref<2x128xf32, #tpu.memory_space<vmem>>, vector<2x128xf32>,
    } else {
    }
    %c0 = arith.constant 0 : index
    %c0_1 = arith.constant 0 : index
    %3 = vector.load %arg2[%c0, %c0_1] : memref<8x128xf32, #tpu.memory_space<vmem>>, vector<1x128xf32>
    %c1 = arith.constant 1 : index
    %c0_2 = arith.constant 0 : index
    %4 = vector.load %arg2[%c1, %c0_2] : memref<8x128xf32, #tpu.memory_space<vmem>>, vector<1x128xf32>
    %5 = arith.mulf %3, %3 : vector<1x128xf32>
    %6 = arith.mulf %4, %4 : vector<1x128xf32>
    %7 = arith.addf %5, %6 : vector<1x128xf32>
    %c0_3 = arith.constant 0 : index
    %c0_4 = arith.constant 0 : index
    %8 = vector.load %arg4[%c0_3, %c0_4] : memref<2x128xi32, #tpu.memory_space<vmem>>, vector<1x128xi32>
    %c1_5 = arith.constant 1 : index
    %c0_6 = arith.constant 0 : index
    %9 = vector.load %arg4[%c1_5, %c0_6] : memref<2x128xi32, #tpu.memory_space<vmem>>, vector<1x128xi32>
    %c0_7 = arith.constant 0 : index
    %c0_8 = arith.constant 0 : index
    %10 = vector.load %arg5[%c0_7, %c0_8] : memref<3x128xf32, #tpu.memory_space<vmem>>, vector<1x128xf32>
    %c1_9 = arith.constant 1 : index
    %c0_10 = arith.constant 0 : index
    %11 = vector.load %arg5[%c1_9, %c0_10] : memref<3x128xf32, #tpu.memory_space<vmem>>, vector<2x128xf32>
    %12 = tpu.iota {dimensions = array<i32: 0>} : vector<128x1xi32>
    %13 = vector.broadcast %12 : vector<128x1xi32> to vector<128x128xi32>
    %14 = vector.broadcast %8 : vector<1x128xi32> to vector<128x128xi32>
    %15 = arith.cmpi eq, %13, %14 : vector<128x128xi32>
    %16 = arith.extui %15 : vector<128x128xi1> to vector<128x128xi32>
    %17 = arith.sitofp %16 : vector<128x128xi32> to vector<128x128xf32>
    %18 = arith.truncf %17 : vector<128x128xf32> to vector<128x128xbf16>
    %19 = arith.truncf %7 : vector<1x128xf32> to vector<1x128xbf16>
    %cst = arith.constant dense<0.000000e+00> : vector<1x128xf32>
    %20 = tpu.matmul %19, %18, %cst {dimension_numbers = #tpu.dot_dimension_numbers<[1], [0], [0], [1], [0, 0, 1, 1], [], []>} : vector<1x128xbf16>, vector<128x128xbf16>, vector<1x128xf32> -> vector<1x128xf32>
    %cst_11 = arith.constant 9.99999997E-7 : f32
    %21 = vector.broadcast %cst_11 : f32 to vector<2x128xf32>
    %22 = arith.addf %11, %21 : vector<2x128xf32>
    %23 = vector.broadcast %10 : vector<1x128xf32> to vector<2x128xf32>
    %24 = arith.divf %23, %22 : vector<2x128xf32>
    %25 = vector.broadcast %20 : vector<1x128xf32> to vector<2x128xf32>
    %26 = arith.mulf %25, %24 : vector<2x128xf32>
    %27 = arith.truncf %26 : vector<2x128xf32> to vector<2x128xbf16>
    %c128_i32 = arith.constant 128 : i32
    %28 = arith.muli %arg0, %c128_i32 : i32
    %29 = tpu.iota {dimensions = array<i32: 0>} : vector<128x1xi32>
    %30 = vector.broadcast %28 : i32 to vector<128x1xi32>
    %31 = arith.addi %30, %29 : vector<128x1xi32>
    %32 = vector.broadcast %31 : vector<128x1xi32> to vector<128x128xi32>
    %33 = vector.broadcast %8 : vector<1x128xi32> to vector<128x128xi32>
    %34 = arith.cmpi eq, %32, %33 : vector<128x128xi32>
    %35 = vector.broadcast %31 : vector<128x1xi32> to vector<128x128xi32>
    %36 = vector.broadcast %9 : vector<1x128xi32> to vector<128x128xi32>
    %37 = arith.cmpi eq, %35, %36 : vector<128x128xi32>
    %38 = arith.ori %34, %37 : vector<128x128xi1>
    %39 = arith.extui %38 : vector<128x128xi1> to vector<128x128xi32>
    %40 = arith.sitofp %39 : vector<128x128xi32> to vector<128x128xf32>
    %41 = arith.truncf %40 : vector<128x128xf32> to vector<128x128xbf16>
    %c0_12 = arith.constant 0 : index
    %c0_13 = arith.constant 0 : index
    %42 = vector.load %arg7[%c0_12, %c0_13] : memref<2x128xf32, #tpu.memory_space<vmem>>, vector<2x128xf32>
    %cst_14 = arith.constant dense<0.000000e+00> : vector<2x128xf32>
    %43 = tpu.matmul %27, %41, %cst_14 {dimension_numbers = #tpu.dot_dimension_numbers<[1], [1], [0], [0], [0, 0, 1, 0], [], []>} : vector<2x128xbf16>, vector<128x128xbf16>, vector<2x128xf32> -> vector<2x128xf32>
    %44 = arith.addf %42, %43 : vector<2x128xf32>
    %c0_15 = arith.constant 0 : index
    %c0_16 = arith.constant 0 : index
    %45 = vector.load %arg7[%c0_15, %c0_16] : memref<2x128xf32, #tpu.memory_space<vmem>>, vector<2x128xf32>
    tpu.vector_store %arg7[%c0_15, %c0_16], %44 {strides = array<i32>} : memref<2x128xf32, #tpu.memory_space<vmem>>, vector<2x128xf32>,
    %c0_i32_17 = arith.constant 0 : i32
    %46 = arith.cmpi eq, %arg1, %c0_i32_17 : i32
    %47 = arith.extui %46 : i1 to i32
    %c0_i32_18 = arith.constant 0 : i32
    %48 = arith.cmpi ne, %47, %c0_i32_18 : i32
    scf.if %48 {
      %c0_19 = arith.constant 0 : index
      %c0_20 = arith.constant 0 : index
      %49 = vector.load %arg3[%c0_19, %c0_20] : memref<8x128xf32, #tpu.memory_space<vmem>>, vector<8x128xf32>
      %50 = vector.extract_strided_slice %49 {offsets = [2, 0], sizes = [1, 128], strides = [1, 1]} : vector<8x128xf32> to vector<1x128xf32>
      %51 = vector.extract_strided_slice %49 {offsets = [3, 0], sizes = [1, 128], strides = [1, 1]} : vector<8x128xf32> to vector<1x128xf32>
      %52 = vector.extract_strided_slice %49 {offsets = [4, 0], sizes = [1, 128], strides = [1, 1]} : vector<8x128xf32> to vector<1x128xf32>
      %c0_21 = arith.constant 0 : index
      %c0_22 = arith.constant 0 : index
      %53 = vector.load %arg7[%c0_21, %c0_22] : memref<2x128xf32, #tpu.memory_space<vmem>>, vector<2x128xf32>
      %54 = vector.extract_strided_slice %53 {offsets = [0, 0], sizes = [1, 128], strides = [1, 1]} : vector<2x128xf32> to vector<1x128xf32>
      %55 = arith.addf %50, %54 : vector<1x128xf32>
      %56 = arith.mulf %55, %55 : vector<1x128xf32>
      %57 = vector.extract_strided_slice %53 {offsets = [1, 0], sizes = [1, 128], strides = [1, 1]} : vector<2x128xf32> to vector<1x128xf32>
      %58 = arith.addf %51, %57 : vector<1x128xf32>
      %59 = arith.mulf %58, %58 : vector<1x128xf32>
      %60 = arith.addf %56, %59 : vector<1x128xf32>
      %61 = arith.mulf %60, %52 : vector<1x128xf32>
      %62 = vector.shape_cast %61 : vector<1x128xf32> to vector<1x1x128xf32>
      %cst_23 = arith.constant dense<0.000000e+00> : vector<1xf32>
      %63 = vector.multi_reduction <add>, %62, %cst_23 [1, 2] : vector<1x1x128xf32> to vector<1xf32>
      %64 = vector.shape_cast %63 : vector<1xf32> to vector<1x1x1xf32>
      %65 = vector.extract %64[0, 0, 0] : f32 from vector<1x1x1xf32>
      %66 = vector.extract_strided_slice %49 {offsets = [0, 0], sizes = [1, 128], strides = [1, 1]} : vector<8x128xf32> to vector<1x128xf32>
      %67 = arith.mulf %66, %66 : vector<1x128xf32>
      %68 = vector.extract_strided_slice %49 {offsets = [1, 0], sizes = [1, 128], strides = [1, 1]} : vector<8x128xf32> to vector<1x128xf32>
      %69 = arith.mulf %68, %68 : vector<1x128xf32>
      %70 = arith.addf %67, %69 : vector<1x128xf32>
      %71 = math.sqrt %70 : vector<1x128xf32>
      %cst_24 = arith.constant 0.949999988 : f32
      %72 = vector.broadcast %cst_24 : f32 to vector<1x128xf32>
      %73 = arith.subf %72, %71 : vector<1x128xf32>
      %cst_25 = arith.constant 0.000000e+00 : f32
      %74 = vector.broadcast %cst_25 : f32 to vector<1x128xf32>
      %75 = arith.maximumf %73, %74 : vector<1x128xf32>
      %cst_26 = arith.constant 1.050000e+00 : f32
      %76 = vector.broadcast %cst_26 : f32 to vector<1x128xf32>
      %77 = arith.subf %71, %76 : vector<1x128xf32>
      %cst_27 = arith.constant 0.000000e+00 : f32
      %78 = vector.broadcast %cst_27 : f32 to vector<1x128xf32>
      %79 = arith.maximumf %77, %78 : vector<1x128xf32>
      %80 = arith.mulf %75, %75 : vector<1x128xf32>
      %81 = arith.mulf %79, %79 : vector<1x128xf32>
      %82 = arith.addf %80, %81 : vector<1x128xf32>
      %83 = arith.mulf %82, %52 : vector<1x128xf32>
      %84 = vector.shape_cast %83 : vector<1x128xf32> to vector<1x1x128xf32>
      %cst_28 = arith.constant dense<0.000000e+00> : vector<1xf32>
      %85 = vector.multi_reduction <add>, %84, %cst_28 [1, 2] : vector<1x1x128xf32> to vector<1xf32>
      %86 = vector.shape_cast %85 : vector<1xf32> to vector<1x1x1xf32>
      %87 = vector.extract %86[0, 0, 0] : f32 from vector<1x1x1xf32>
      %88 = arith.addf %65, %87 : f32
      %cst_29 = arith.constant 6.250000e-02 : f32
      %89 = arith.mulf %88, %cst_29 : f32
      %90 = vector.broadcast %89 : f32 to vector<8x128xf32>
      %c0_30 = arith.constant 0 : index
      %c0_31 = arith.constant 0 : index
      %91 = vector.load %arg6[%c0_30, %c0_31] : memref<8x128xf32, #tpu.memory_space<vmem>>, vector<8x128xf32>
      tpu.vector_store %arg6[%c0_30, %c0_31], %90 {strides = array<i32>} : memref<8x128xf32, #tpu.memory_space<vmem>>, vector<8x128xf32>,
    } else {
    }
    return
  }
  func.func @transform_0(%arg0: i32, %arg1: i32) -> (i32, i32) {
    %c0_i32 = arith.constant 0 : i32
    %c0_i32_0 = arith.constant 0 : i32
    %c0_i32_1 = arith.constant 0 : i32
    return %c0_i32, %c0_i32_0 : i32, i32
  }
  func.func @transform_1(%arg0: i32, %arg1: i32) -> (i32, i32) {
    %c0_i32 = arith.constant 0 : i32
    %c0_i32_0 = arith.constant 0 : i32
    return %c0_i32, %arg0 : i32, i32
  }
  func.func @transform_2(%arg0: i32, %arg1: i32) -> (i32, i32) {
    %c0_i32 = arith.constant 0 : i32
    %c0_i32_0 = arith.constant 0 : i32
    return %c0_i32, %arg1 : i32, i32
  }
  func.func @transform_3(%arg0: i32, %arg1: i32) -> (i32, i32) {
    %c0_i32 = arith.constant 0 : i32
    %c0_i32_0 = arith.constant 0 : i32
    return %c0_i32, %arg1 : i32, i32
  }
  func.func @transform_4(%arg0: i32, %arg1: i32) -> (i32, i32) {
    %c0_i32 = arith.constant 0 : i32
    %c0_i32_0 = arith.constant 0 : i32
    return %arg0, %c0_i32 : i32, i32
  }
}

</mosaic_0001>

<bundles_post_ra>
// kernel: tpu_custom_call.1
= control target key start
LH: loop header
LB: loop body
LE: loop exit
PB: predicated region body
PF: predicated region fallthrough
CT: control target
= control target key end

     0   :  { %9 = vsyncpa [#allocation4], 0  ;;  %s835_s0 = inlined_call_operand.hbm [shape: f32[8,128], index: 0, kind: input, shape index: {}]   ;;  %s836_s1 = inlined_call_operand.hbm [shape: f32[8,128], index: 1, kind: input, shape index: {}]   ;;  %s837_s2 = inlined_call_operand.hbm [shape: s32[2,128], index: 2, kind: input, shape index: {}]   ;;  %s838_s3 = inlined_call_operand.hbm [shape: f32[3,128], index: 3, kind: input, shape index: {}]   ;;  %s839_s4 = inlined_call_operand.hbm [shape: f32[8,128], index: 4, kind: output, shape index: {}]  }
   0x1   :  { %10 = vsyncpa [#allocation7], 0 }
   0x2   :  { %11 = vsyncpa [#allocation10], 0  ;;  %s29_s17 = sshll.u32 %s836_s1, 4  ;;  %s30_s17 = int_to_ptr.hbm [resolvable:$true] %s29_s17 }
   0x3   :  { %12 = vsyncpa [#allocation5], 0  ;;  %s621_s18 = smov [#allocation6]   ;;  %s18_s22 = sshll.u32 %s835_s0, 4  ;;  %s19_s22 = int_to_ptr.hbm [resolvable:$true] %s18_s22 }
   0x4   :  { %s31_s19 = sshll.u32 %s621_s18, 4  ;;  %s622_s23 = smov [#allocation3]   ;;  %s32_s19 = int_to_ptr.vmem [resolvable:$true] %s31_s19 }
   0x5   :  { %34 = dma.hbm_to_vmem [thread:$0]  %s30_s17, 128, %s32_s19, [#allocation7]  }
   0x6   :  { %s20_s24 = sshll.u32 %s622_s23, 4  ;;  %s40_s27 = sshll.u32 %s837_s2, 4  ;;  %s21_s24 = int_to_ptr.vmem [resolvable:$true] %s20_s24  ;;  %s41_s27 = int_to_ptr.hbm [resolvable:$true] %s40_s27 }
   0x7   :  { %23 = dma.hbm_to_vmem [thread:$0]  %s19_s22, 128, %s21_s24, [#allocation4]  }
   0x8   :  { %s51_s29 = sshll.u32 %s838_s3, 4  ;;  %s623_s30 = smov [#allocation8]   ;;  %s52_s29 = int_to_ptr.hbm [resolvable:$true] %s51_s29 }
   0x9   :  { %s42_s5 = sshll.u32 %s623_s30, 4  ;;  %s624_s0 = smov [#allocation9]   ;;  %s43_s5 = int_to_ptr.vmem [resolvable:$true] %s42_s5 }
   0xa   :  { %45 = dma.hbm_to_vmem [thread:$0]  %s41_s27, 32, %s43_s5, [#allocation7]  }
   0xb   :  { %s53_s6 = sshll.u32 %s624_s0, 4  ;;  %s54_s6 = int_to_ptr.vmem [resolvable:$true] %s53_s6 }
   0xc   :  { %56 = dma.hbm_to_vmem [thread:$0]  %s52_s29, 64, %s54_s6, [#allocation10]  }
   0xd   :  { %613 = dma.done.wait [#allocation4], 128  }
   0xe   :  { %614 = vsyncadd [#allocation4], 4294967168 }
   0xf   :  { %615 = dma.done.wait [#allocation7], 160  }
  0x10   :  { %616 = vsyncadd [#allocation7], 4294967136 }
  0x11   :  { %617 = dma.done.wait [#allocation10], 64  }
  0x12   :  { %618 = vsyncadd [#allocation10], 4294967232  ;;  %v87_v0 = vlaneseq  ;;  %v671_v6 = vld [vmem:[#allocation8] ss:$0 sm:$0xff]  ;;  %v625_v11 = vmov 1.0|1.0  }
  0x13   :  { %v690_v12 = vld [vmem:[#allocation8 + $0x1] ss:$0 sm:$0xff]  ;;  %v78_v22 = vld [vmem:[#allocation3] sm:$0x1]  ;;  %v79_v23 = vld [vmem:[#allocation3 + $0x1] sm:$0x1] }
  0x14   :  { %v665_v1 = vshrl.u32 %v87_v0, 7  ;;  %v80_v25 = vmul.f32 %v78_v22, %v78_v22  ;;  %v81_v26 = vmul.f32 %v79_v23, %v79_v23  ;;  %v86_v29 = vld [vmem:[#allocation9 + $0x1] sm:$0x3]  ;;  %v626_v33 = vmov 0.0   ;;  %v488_v41 = vld [vmem:[#allocation9] ss:$0 sm:$0xff] }
  0x15   :  { %v175_v30 = vadd.f32 1e-06, %v86_v29  ;;  %77 = vst [vmem:[#allocation2] sm:$0x3] %v626_v33  ;;  %v321_v49 = vld [vmem:[#allocation6] sm:$0xff]  ;;  %s627_s7 = smov [#allocation11]  }
  0x16   :  { %v102_v2 = vadd.s32 112, %v665_v1  ;;  %v103_v3 = vadd.s32 120, %v665_v1  ;;  %v100_v4 = vadd.s32 96, %v665_v1  ;;  %v101_v5 = vadd.s32 104, %v665_v1  ;;  %s396_s8 = sshll.u32 %s627_s7, 4  ;;  %s398_s12 = sshll.u32 %s839_s4, 4  ;;  %s397_s8 = int_to_ptr.vmem [resolvable:$true] %s396_s8  ;;  %s399_s12 = int_to_ptr.hbm [resolvable:$true] %s398_s12 }
  0x17   :  { %v98_v7 = vadd.s32 80, %v665_v1  ;;  %v99_v8 = vadd.s32 88, %v665_v1  ;;  %v684_v9 = vadd.s32 64, %v665_v1  ;;  %v687_v10 = vadd.s32 72, %v665_v1 }
  0x18   :  { %vm119_vm0 = vcmp.eq.s32.totalorder %v102_v2, %v671_v6  ;;  %vm120_vm1 = vcmp.eq.s32.totalorder %v103_v3, %v671_v6  ;;  %vm117_vm2 = vcmp.eq.s32.totalorder %v100_v4, %v671_v6  ;;  %vm118_vm3 = vcmp.eq.s32.totalorder %v101_v5, %v671_v6 }
  0x19   :  { %vm426_vm4 = vmpackc.low %vm120_vm1, %vm119_vm0  ;;  %vm115_vm6 = vcmp.eq.s32.totalorder %v98_v7, %v671_v6  ;;  %vm842_vm7 = vcmp.eq.s32.totalorder %v99_v8, %v671_v6  ;;  %vm841_vm8 = vcmp.eq.s32.totalorder %v684_v9, %v671_v6  ;;  %vm840_vm9 = vcmp.eq.s32.totalorder %v687_v10, %v671_v6 }
  0x1a   :  { %427 = vmatpush.bf16.msk.msra.mxu0 %vm426_vm4, %v625_v11  ;;  %vm428_vm5 = vmpackc.low %vm118_vm3, %vm117_vm2  ;;  %vm244_vm10 = vcmp.eq.s32.totalorder %v102_v2, %v690_v12  ;;  %vm245_vm12 = vcmp.eq.s32.totalorder %v103_v3, %v690_v12  ;;  %v94_v14 = vadd.s32 48, %v665_v1  ;;  %v95_v15 = vadd.s32 56, %v665_v1 }
  0x1b   :  { %vm430_vm11 = vmpackc.low %vm842_vm7, %vm115_vm6  ;;  %vm242_vm4 = vcmp.eq.s32.totalorder %v100_v4, %v690_v12  ;;  %v92_v16 = vadd.s32 32, %v665_v1  ;;  %v93_v17 = vadd.s32 40, %v665_v1  ;;  %v90_v20 = vadd.s32 16, %v665_v1 }
  0x1c   :  { %vm715_vm13 = vmpackc.low %vm840_vm9, %vm841_vm8  ;;  %vm243_vm9 = vcmp.eq.s32.totalorder %v101_v5, %v690_v12  ;;  %vm111_vm8 = vcmp.eq.s32.totalorder %v94_v14, %v671_v6  ;;  %vm112_vm7 = vcmp.eq.s32.totalorder %v95_v15, %v671_v6  ;;  %v91_v21 = vadd.s32 24, %v665_v1  ;;  %v302_v59 = vld [vmem:[#allocation2] sm:$0x3] }
  0x1d   :  { %vm260_vm14 = vmor %vm119_vm0, %vm244_vm10  ;;  %v89_v24 = vadd.s32 8, %v665_v1  ;;  %v82_v27 = vadd.f32 %v81_v26, %v80_v25  ;;  %489 = vrcp.f32 %v175_v30  ;;  %v188_v36 = vand.u32 2147483648, %v175_v30 }
  0x1e   :  { %429 = vmatpush.bf16.msk.msra.mxu0 %vm428_vm5, %v625_v11  ;;  %vm261_vm15 = vmor %vm120_vm1, %vm245_vm12  ;;  %v186_v38 = vand.u32 2147483647, %v175_v30  ;;  %v350_v50 = vmul.f32 %v321_v49, %v321_v49  ;;  %v374_v19 = vrot.slane %v321_v49, 4 }
  0x1f   :  { %vm458_vm5 = vmpackc.low %vm261_vm15, %vm260_vm14  ;;  %vm107_vm14 = vcmp.eq.s32.totalorder %v90_v20, %v671_v6  ;;  %vm846_vm15 = vcmp.eq.s32.totalorder %v91_v21, %v671_v6  ;;  %v161_v28 = vpack.c.bf16 %v82_v27, %v82_v27  ;;  %v189_v39 = vor.u32 1.1754944e-38, %v188_v36 }
  0x20   :  { %459 = vmatpush.bf16.xpose.msk.msra.mxu1 %vm458_vm5, %v625_v11  ;;  %vm735_vm0 = vmor %vm117_vm2, %vm242_vm4  ;;  %vm109_vm2 = vcmp.eq.s32.totalorder %v92_v16, %v671_v6  ;;  %vm853_vm5 = vcmp.eq.s32.totalorder %v99_v8, %v671_v6  ;;  %v352_v51 = vrot.slane %v350_v50, 1 }
  0x21   :  { %vm744_vm1 = vmor %vm118_vm3, %vm243_vm9  ;;  %vm240_vm9 = vcmp.eq.s32.totalorder %v98_v7, %v690_v12 }
  0x22   :  { %431 = vmatpush.bf16.msk.msra.mxu0 %vm430_vm11, %v625_v11  ;;  %vm434_vm10 = vmpackc.low %vm112_vm7, %vm111_vm8  ;;  %vm843_vm11 = vcmp.eq.s32.totalorder %v93_v17, %v671_v6  ;;  %v354_v52 = vadd.f32 %v352_v51, %v350_v50 }
  0x23   :  { %vm460_vm3 = vmpackc.low %vm744_vm1, %vm735_vm0  ;;  %v490_v31 = vpop.eup %489 }
  0x24   :  { %vm436_vm12 = vmpackc.low %vm843_vm11, %vm109_vm2  ;;  %v178_v32 = vmul.f32 %v490_v31, %v175_v30  ;;  %491 = vrsqrt.f32 %v354_v52  ;;  %v365_v63 = vand.u32 2147483648, %v354_v52 }
  0x25   :  { %vm256_vm4 = vmor %vm115_vm6, %vm240_vm9  ;;  %vm238_vm6 = vcmp.eq.s32.totalorder %v684_v9, %v690_v12 }
  0x26   :  { %433 = vmatpush.bf16.msk.msra.mxu0 %vm715_vm13, %v625_v11  ;;  %vm241_vm13 = vcmp.eq.s32.totalorder %v99_v8, %v690_v12  ;;  %vm438_vm1 = vmpackc.low %vm846_vm15, %vm107_vm14  ;;  %vm235_vm15 = vcmp.eq.s32.totalorder %v93_v17, %v690_v12  ;;  %v179_v34 = vsub.f32 1.0, %v178_v32 }
  0x27   :  { %vm257_vm0 = vmor %vm853_vm5, %vm241_vm13  ;;  %vm854_vm13 = vcmp.eq.s32.totalorder %v684_v9, %v671_v6  ;;  %vm855_vm5 = vcmp.eq.s32.totalorder %v687_v10, %v671_v6 }
  0x28   :  { %461 = vmatpush.bf16.xpose.msk.msra.mxu1 %vm460_vm3, %v625_v11  ;;  %vm844_vm3 = vcmp.eq.s32.totalorder %v89_v24, %v671_v6  ;;  %vm462_vm11 = vmpackc.low %vm257_vm0, %vm256_vm4  ;;  %v180_v35 = vmul.f32 %v490_v31, %v179_v34 }
  0x29   :  { %vm254_vm4 = vmor %vm854_vm13, %vm238_vm6 }
  0x2a   :  { %435 = vmatpush.bf16.msk.msra.mxu0 %vm434_vm10, %v625_v11  ;;  %vm845_vm10 = vcmp.eq.s32.totalorder %v665_v1, %v671_v6  ;;  %v181_v37 = vadd.f32 %v490_v31, %v180_v35  ;;  %v492_v53 = vpop.eup %491 }
  0x2b   :  { %vm440_vm9 = vmpackc.low %vm844_vm3, %vm845_vm10  ;;  %vm236_vm3 = vcmp.eq.s32.totalorder %v94_v14, %v690_v12  ;;  %vm237_vm10 = vcmp.eq.s32.totalorder %v95_v15, %v690_v12  ;;  %v356_v54 = vmul.f32 %v492_v53, %v354_v52 }
  0x2c   :  { %vm253_vm6 = vmor %vm112_vm7, %vm237_vm10  ;;  %vm857_vm10 = vcmp.eq.s32.totalorder %v91_v21, %v671_v6 }
  0x2d   :  { %v357_v55 = vmul.f32 %v492_v53, %v356_v54 }
  0x2e   :  { %437 = vmatpush.bf16.msk.msra.mxu0 %vm436_vm12, %v625_v11  ;;  %vm239_vm12 = vcmp.eq.s32.totalorder %v687_v10, %v690_v12 }
  0x2f   :  { %vm255_vm0 = vmor %vm855_vm5, %vm239_vm12  ;;  %v358_v56 = vmul.f32 0.5, %v357_v55 }
  0x30   :  { %463 = vmatpush.bf16.xpose.msk.msra.mxu1 %vm462_vm11, %v625_v11  ;;  %vm252_vm11 = vmor %vm111_vm8, %vm236_vm3  ;;  %vm233_vm8 = vcmp.eq.s32.totalorder %v91_v21, %v690_v12 }
  0x31   :  { %vm466_vm13 = vmpackc.low %vm253_vm6, %vm252_vm11  ;;  %vm858_vm6 = vcmp.eq.s32.totalorder %v665_v1, %v671_v6  ;;  %v359_v57 = vsub.f32 1.5, %v358_v56 }
  0x32   :  { %439 = vmatpush.bf16.msk.msra.mxu0 %vm438_vm1, %v625_v11  ;;  %vm464_vm1 = vmpackc.low %vm255_vm0, %vm254_vm4  ;;  %vm856_vm4 = vcmp.eq.s32.totalorder %v93_v17, %v671_v6 }
  0x33   :  { %vm251_vm5 = vmor %vm856_vm4, %vm235_vm15  ;;  %vm231_vm15 = vcmp.eq.s32.totalorder %v89_v24, %v690_v12  ;;  %vm182_vm4 = vweird.f32 %v175_v30  ;;  %v360_v58 = vmul.f32 %v492_v53, %v359_v57 }
  0x34   :  { %vm249_vm3 = vmor %vm857_vm10, %vm233_vm8  ;;  %vm362_vm8 = vcmp.eq.f32.partialorder %v354_v52, inf  ;;  %vm339_vm10 = vcmask 1040384  }
  0x35   :  { %v361_v62 = vmul.f32 %v360_v58, %v354_v52 }
  0x36   :  { %441 = vmatpush.bf16.msk.msra.mxu0 %vm440_vm9, %v625_v11  ;;  %vm234_vm9 = vcmp.eq.s32.totalorder %v92_v16, %v690_v12 }
  0x37   :  { %vm250_vm12 = vmor %vm109_vm2, %vm234_vm9  ;;  %vm230_vm2 = vcmp.eq.s32.totalorder %v665_v1, %v690_v12  ;;  %vm859_vm9 = vcmp.eq.s32.totalorder %v89_v24, %v671_v6  ;;  %v363_v0 = vsel %vm362_vm8, %v354_v52, %v361_v62 }
  0x38   :  { %465 = vmatpush.bf16.xpose.msk.msra.mxu1 %vm464_vm1, %v625_v11  ;;  %vm468_vm0 = vmpackc.low %vm251_vm5, %vm250_vm12  ;;  %vm232_vm1 = vcmp.eq.s32.totalorder %v90_v20, %v690_v12  ;;  %vm183_vm5 = vweird.f32 %v490_v31  ;;  %v333_v12 = vrot.slane %v321_v49, 2 }
  0x39   :  { %170 = vmatmul.bf16.vlgmr.msra.gmra.mxu0 %v161_v28  ;;  %vm248_vm7 = vmor %vm107_vm14, %vm232_vm1  ;;  %vm187_vm1 = vcmp.eq.f32.partialorder %v186_v38, 8.507059e+37 }
  0x3a   :  { %vm470_vm11 = vmpackc.low %vm249_vm3, %vm248_vm7  ;;  %vm364_vm7 = vcmp.eq.f32.partialorder %v354_v52, 0.0 }
  0x3b   :  { %vm247_vm14 = vmor %vm859_vm9, %vm231_vm15  ;;  %v366_v2 = vsel %vm364_vm7, %v365_v63, %v363_v0 }
  0x3c   :  { %v367_v5 = vsub.f32 0.95, %v366_v2  ;;  %v474_v6 = vadd.f32 -1.05, %v366_v2 }
  0x3e   :  { %v368_v9 = vmax.f32 %v367_v5, 0.0  ;;  %v370_v10 = vmax.f32 %v474_v6, 0.0 }
  0x40   :  { %467 = vmatpush.bf16.xpose.msk.msra.mxu1 %vm466_vm13, %v625_v11  ;;  %vm246_vm13 = vmor %vm858_vm6, %vm230_vm2  ;;  %v371_v14 = vmul.f32 %v368_v9, %v368_v9  ;;  %v372_v15 = vmul.f32 %v370_v10, %v370_v10 }
  0x41   :  { %vm472_vm12 = vmpackc.low %vm247_vm14, %vm246_vm13 }
  0x42   :  { %v373_v18 = vadd.f32 %v372_v15, %v371_v14 }
  0x44   :  { %v376_v21 = vmul.f32 %v374_v19, %v373_v18 }
  0x46   :  { %v377_v22 = vsel %vm339_vm10, %v376_v21, 0.0 }
  0x48   :  { %469 = vmatpush.bf16.xpose.msk.msra.mxu1 %vm468_vm0, %v625_v11  ;;  %vm184_vm0 = vmor %vm182_vm4, %vm183_vm5 }
  0x49   :  { %v185_v40 = vsel %vm184_vm0, %v490_v31, %v181_v37 }
  0x4a   :  { %v190_v42 = vsel %vm187_vm1, %v189_v39, %v185_v40 }
  0x4b   :  { %v191_v43 = vmul.f32 %v488_v41, %v190_v42 }
  0x50   :  { %471 = vmatpush.bf16.xpose.msk.msra.mxu1 %vm470_vm11, %v625_v11 }
  0x58   :  { %473 = vmatpush.bf16.xpose.msk.msra.mxu1 %vm472_vm12, %v625_v11 }
  0xb6   :  { %v171_v44 = vpop.f32.mrf.mxu0 }
  0xb7   :  { %v192_v45 = vperm.slane %v171_v44, 0 }
  0xb9   :  { %v193_v46 = vmul.f32 %v192_v45, %v191_v43 }
  0xbb   :  { %v194_v47 = vpack.c.bf16 %v193_v46, %v193_v46 }
  0xbd   :  { %311 = vmatmul.bf16.vlgmr.msra.gmra.mxu1 %v194_v47 }
  0xbe   :  { %v173_v48 = vpop.f32.mrf.mxu0 }
 0x13a   :  { %v312_v60 = vpop.f32.mrf.mxu1 }
 0x13b   :  { %v316_v61 = vadd.f32 %v312_v60, %v302_v59 }
 0x13d   :  { %317 = vst [vmem:[#allocation2] sm:$0x3] %v316_v61 }
 0x142   :  { %v314_v1 = vpop.f32.mrf.mxu1 }
 0x144   :  { %v322_v3 = vld [vmem:[#allocation2] sm:$0x3] }
 0x145   :  { %v324_v4 = vrot.slane %v322_v3, 6 }
 0x147   :  { %v326_v7 = vadd.f32 %v324_v4, %v321_v49 }
 0x149   :  { %v327_v8 = vmul.f32 %v326_v7, %v326_v7 }
 0x14b   :  { %v329_v11 = vrot.slane %v327_v8, 1 }
 0x14d   :  { %v331_v13 = vadd.f32 %v329_v11, %v327_v8 }
 0x14f   :  { %v335_v16 = vmul.f32 %v333_v12, %v331_v13 }
 0x151   :  { %v337_v17 = vrot.slane %v335_v16, 2 }
 0x153   :  { %v340_v20 = vsel %vm339_vm10, %v337_v17, 0.0 }
 0x154   :  { %341 = vadd.xlane.f32.xlu0 %v340_v20 }
 0x15c   :  { %378 = vadd.xlane.f32.xlu0 %v377_v22 }
 0x1c7   :  { %v342_v23 = vpop.xlane.xlu0 %341 }
 0x1c8   :  { %v343_v24 = vrot.slane %v342_v23, 4 }
 0x1ca   :  { %v344_v25 = vadd.f32 %v343_v24, %v342_v23 }
 0x1cc   :  { %v345_v26 = vrot.slane %v344_v25, 2 }
 0x1ce   :  { %v346_v27 = vadd.f32 %v345_v26, %v344_v25 }
 0x1cf   :  { %v379_v28 = vpop.xlane.xlu0 %378 }
 0x1d0   :  { %v380_v29 = vrot.slane %v379_v28, 4  ;;  %v347_v30 = vrot.slane %v346_v27, 1 }
 0x1d2   :  { %v381_v31 = vadd.f32 %v380_v29, %v379_v28  ;;  %v348_v32 = vadd.f32 %v347_v30, %v346_v27 }
 0x1d4   :  { %v382_v33 = vrot.slane %v381_v31, 2  ;;  %475 = vpush %v348_v32 }
 0x1d6   :  { %v383_v34 = vadd.f32 %v382_v33, %v381_v31 }
 0x1d8   :  { %v384_v35 = vrot.slane %v383_v34, 1 }
 0x1da   :  { %v385_v36 = vadd.f32 %v384_v35, %v383_v34 }
 0x1dc   :  { %477 = vpush %v385_v36 }
 0x205   :  { %s476_s2 = spop %475 }
 0x20d   :  { %s478_s3 = spop %477 }
 0x20e   :  { %s387_s9 = sadd.f32 %s478_s3, %s476_s2 }
 0x210   :  { %s388_s13 = smul.f32 0.0625, %s387_s9 }
 0x212   :  { %v389_v37 = vstv %s388_s13 }
 0x213   :  { %390 = vst [vmem:[#allocation11] sm:$0xff] %v389_v37 }
 0x214   :  { %401 = dma.vmem_to_hbm [thread:$0]  %s397_s8, 128, %s399_s12, [#allocation5]  }
 0x215   :  { %619 = dma.done.wait [#allocation5], 128  }
 0x216   :  { %620 = vsyncadd [#allocation5], 4294967168 }
 0x217   :  { %406 = vsyncpa [#allocation4], 1 }
 0x218   :  { %407 = vsyncpa [#allocation7], 1 }
 0x219   :  { %408 = vsyncpa [#allocation10], 1 }
 0x21a   :  { %409 = vsyncpa [#allocation5], 1 }

</bundles_post_ra>
